<compile_context>
chip_gen: v5e
topology: v5e:2x2
jax: 0.10.0
libtpu: 0.0.40
codegen_flags: <defaults>
</compile_context>

<pallas_src>
import math
import functools

import jax
import jax.numpy as jnp
from jax.experimental import pallas as pl
from jax.experimental.pallas import tpu as pltpu


def _round_up(x, m):
    return ((x + m - 1) // m) * m


def _moe_gate_kernel(x_ref, wt_ref, idx_ref, wgt_ref, *aux_refs,
                     top_k, num_experts, n_tokens, tm, compute_aux):
    """One tile of up to `tm` tokens: logits = x @ W^T, softmax, top-k, aux partials."""
    i = pl.program_id(0)

    x = x_ref[...]                                      # (tm, h) native dtype
    wt = wt_ref[...]                                    # (h, E)  native dtype
    logits = jnp.dot(x, wt, preferred_element_type=jnp.float32)    # (tm, E) f32

    # Numerically-stable softmax (exact division for parity with the reference).
    m = jnp.max(logits, axis=-1, keepdims=True)
    e = jnp.exp(logits - m)
    denom = jnp.sum(e, axis=-1, keepdims=True)

    if compute_aux:
        scores = e / denom               # full softmax is needed for the Pi statistic
        key_src = scores
    else:
        scores = None
        key_src = e                      # same ordering; winners rescaled at the end

    # Pack (value | tie-break index) into one monotone int32 key so each top-k step
    # costs exactly one cross-lane reduction.  key_src >= 0 so its f32 bit pattern is
    # monotone as int32; the low ceil(log2(E)) bits carry (E-1-index) so the larger
    # score wins and ties break toward the lower expert index.
    idx_bits = max(1, (num_experts - 1).bit_length())
    low_mask = (1 << idx_bits) - 1
    expert_iota = jax.lax.broadcasted_iota(jnp.int32, key_src.shape, 1)
    keys = (pltpu.bitcast(key_src, jnp.int32) & ~low_mask) | (num_experts - 1 - expert_iota)

    neg_key = jnp.int32(jnp.iinfo(jnp.int32).min)
    idx_cols, wgt_cols = [], []
    sel_total = jnp.zeros(key_src.shape, jnp.float32) if compute_aux else None
    for _ in range(top_k):
        best = jnp.max(keys, axis=-1, keepdims=True)          # (tm, 1) int32
        sel = keys == best                                     # exactly one hit per row
        idx_cols.append((num_experts - 1) - (best & low_mask))
        # Exact value: re-gather from the scores instead of clearing mantissa bits.
        wgt_cols.append(jnp.sum(jnp.where(sel, key_src, 0.0), axis=-1, keepdims=True))
        if compute_aux:
            sel_total = sel_total + sel.astype(jnp.float32)
        keys = jnp.where(sel, neg_key, keys)

    idx_ref[...] = jnp.concatenate(idx_cols, axis=-1)
    wgt = jnp.concatenate(wgt_cols, axis=-1)
    if not compute_aux:
        wgt = wgt / denom                # softmax-normalize only the k winners
    wgt_ref[...] = wgt.astype(wgt_ref.dtype)

    if compute_aux:
        aux_ref, = aux_refs
        # Mask rows past the (unpadded) token stream with a select (NOT a multiply, so
        # NaN/Inf garbage in a partial last block cannot propagate), then reduce the
        # token axis on the MXU, which is idle after the gate matmul.
        row = i * tm + jax.lax.broadcasted_iota(jnp.int32, (tm, 1), 0)
        valid = row < n_tokens
        ones_row = jnp.ones((1, tm), jnp.float32)
        part_scores = jnp.dot(ones_row, jnp.where(valid, scores, 0.0),
                              preferred_element_type=jnp.float32)       # (1, E)
        part_counts = jnp.dot(ones_row, jnp.where(valid, sel_total, 0.0),
                              preferred_element_type=jnp.float32)       # (1, E)
        aux_ref[:, 0:1, :] = part_scores.reshape(1, 1, num_experts)
        aux_ref[:, 1:2, :] = part_counts.reshape(1, 1, num_experts)


def moe_gate(hidden_states, weight, *, top_k=2, alpha=0.01, training=True,
             tm=None, interpret=False):
    """Pallas implementation of MoEGate.forward.

    Returns (topk_idx, topk_weight, aux_loss) like the PyTorch module
    (scoring_func='softmax', norm_topk_prob=False, seq_aux=False); topk_weight is f32.
    """
    bsz, seq_len, h = hidden_states.shape
    x = hidden_states.reshape(-1, h)
    n = x.shape[0]
    num_experts = int(weight.shape[0])
    top_k = int(top_k)
    compute_aux = bool(training) and float(alpha) > 0.0

    # Hoist the weight transpose + cast out of the kernel (done once, not per tile).
    wt = weight.astype(x.dtype).T                     # (h, E)

    # ---- generation-aware tiling / VMEM budget -------------------------------------
    itemsize = jnp.dtype(x.dtype).itemsize
    try:
        vmem_cap = int(pltpu.get_tpu_info().vmem_capacity_bytes)
    except Exception:
        vmem_cap = 64 * 1024 * 1024                   # conservative (v7x-sized) default
    small_vmem = vmem_cap <= 64 * 1024 * 1024         # v7x: 64 MiB/TC, 2 TensorCores
    ceiling = min(vmem_cap - (8 << 20), 100 << 20)    # leave headroom below physical
    x_bufs = 3 if small_vmem else 2                   # deeper x pipeline on fast-HBM parts
    lane_e = max(_round_up(num_experts, 128), 128)

    def est_vmem(t):
        return (x_bufs * t * h * itemsize             # token tiles (multi-buffered)
                + h * num_experts * itemsize          # gate weight (single buffer)
                + 12 * t * lane_e * 4                 # f32 logits/scores/keys/masks
                + 4 * t * 128 * 4                     # idx / weight output buffers
                + 4 * 2 * lane_e * 4)                 # aux partial rows

    auto_tile = tm is None
    if auto_tile:
        tm = 512 if small_vmem else 1024              # measured HBM-roofline sweet spot
    tm = max(8, _round_up(int(tm), 8))
    while tm > 128 and est_vmem(tm) > ceiling:        # shrink tm, never clamp the limit
        tm -= 128
    if auto_tile and small_vmem and n > 256:
        tm = min(tm, max(128, _round_up(-(-n // 2), 8)))   # >= 2 tiles for 2 TensorCores
    if n <= tm:
        tm = n                                        # single full block (any n allowed)
    n_tiles = pl.cdiv(n, tm)
    vmem_limit = int(min(ceiling, max(est_vmem(tm) + (4 << 20), 16 << 20)))

    kernel = functools.partial(
        _moe_gate_kernel, top_k=top_k, num_experts=num_experts,
        n_tokens=n, tm=tm, compute_aux=compute_aux)

    out_shape = [jax.ShapeDtypeStruct((n, top_k), jnp.int32),
                 jax.ShapeDtypeStruct((n, top_k), jnp.float32)]
    out_specs = [pl.BlockSpec((tm, top_k), lambda i: (i, 0)),
                 pl.BlockSpec((tm, top_k), lambda i: (i, 0))]
    if compute_aux:
        out_shape.append(jax.ShapeDtypeStruct((n_tiles, 2, num_experts), jnp.float32))
        out_specs.append(pl.BlockSpec((1, 2, num_experts), lambda i: (i, 0, 0)))

    def run(use_pipeline_mode):
        def spec(shape, index_map, buffers=None):
            if use_pipeline_mode and buffers is not None and buffers != 2:
                return pl.BlockSpec(shape, index_map, pipeline_mode=pl.Buffered(buffers))
            return pl.BlockSpec(shape, index_map)

        in_specs = [
            spec((tm, h), lambda i: (i, 0), buffers=x_bufs),       # token tile
            # Grid-invariant gate weight: constant block index, single buffer.
            spec((h, num_experts), lambda i: (0, 0), buffers=1),
        ]
        return pl.pallas_call(
            kernel,
            out_shape=tuple(out_shape),
            grid_spec=pltpu.PrefetchScalarGridSpec(
                num_scalar_prefetch=0,
                grid=(n_tiles,),
                in_specs=in_specs,
                out_specs=tuple(out_specs)),
            compiler_params=pltpu.CompilerParams(
                dimension_semantics=("parallel",),     # tiles are fully independent
                vmem_limit_bytes=vmem_limit),
            interpret=interpret,
        )(x, wt)

    use_pm = hasattr(pl, "Buffered")
    try:
        outs = run(use_pm)
    except Exception:
        if not use_pm:
            raise
        outs = run(False)          # fall back to default double-buffering everywhere

    topk_idx, topk_wgt = outs[0], outs[1]
    if compute_aux:
        part = jnp.sum(outs[2], axis=0)                # (2, E)
        pi = part[0] / n                               # scores.mean(0)
        ce = part[1] / (n * top_k)                     # one_hot(topk_idx).float().mean(0)
        aux_loss = jnp.sum(pi * ce * num_experts) * alpha
    else:
        aux_loss = None
    return topk_idx, topk_wgt, aux_loss


def _init_gate_weight(key, num_experts, embed_dim):
    # torch.nn.init.kaiming_uniform_(W, a=sqrt(5)) on (E, h): bound = 1/sqrt(h)
    bound = 1.0 / math.sqrt(embed_dim)
    return jax.random.uniform(key, (num_experts, embed_dim),
                              dtype=jnp.float32, minval=-bound, maxval=bound)


def _reference(hidden_states, weight, top_k, alpha, num_experts):
    x = hidden_states.reshape(-1, hidden_states.shape[-1])
    logits = jnp.dot(x, weight.astype(x.dtype).T, preferred_element_type=jnp.float32)
    scores = jax.nn.softmax(logits.astype(jnp.float32), axis=-1)
    vals, idx = jax.lax.top_k(scores, top_k)
    ce = jnp.mean(jax.nn.one_hot(idx.reshape(-1), num_experts, dtype=jnp.float32), axis=0)
    pi = scores.mean(0)
    aux = jnp.sum(pi * ce * num_experts) * alpha
    return idx, vals, aux, scores


if __name__ == "__main__":
    root = jax.random.PRNGKey(0)
    keys = jax.random.split(root, 8)

    def run_case(bsz, seq_len, h, num_experts, top_k, dtype, tile, kx, kw, training=True):
        x = jax.random.normal(kx, (bsz, seq_len, h), dtype=jnp.float32).astype(dtype)
        w = _init_gate_weight(kw, num_experts, h)
        idx, wgt, aux = moe_gate(x, w, top_k=top_k, alpha=0.01, training=training, tm=tile)
        jax.block_until_ready((idx, wgt) if aux is None else (idx, wgt, aux))
        ridx, rvals, raux, rscores = _reference(x, w, top_k, 0.01, num_experts)
        n = bsz * seq_len
        assert idx.shape == (n, top_k) and wgt.shape == (n, top_k)
        # top-k values match the reference (both in descending order)
        assert jnp.allclose(wgt, rvals, atol=3e-3, rtol=3e-3), "top-k weights mismatch"
        # returned weight equals the reference softmax prob of the chosen expert
        gathered = jnp.take_along_axis(rscores, idx, axis=-1)
        assert jnp.allclose(wgt, gathered, atol=3e-3, rtol=3e-3), "idx/weight inconsistent"
        if training:
            assert aux is not None
            assert abs(float(aux) - float(raux)) <= 1e-4 + 2e-2 * abs(float(raux)), "aux mismatch"
        else:
            assert aux is None

    # Module defaults: embed_dim=32, 16 experts, top-2 (single tile, auto tile size).
    run_case(2, 8, 32, 16, 2, jnp.float32, None, keys[0], keys[1])
    # Multi-tile grid with a partial last block (n=300, tm=128 -> 128+128+44 rows):
    # exercises unpadded partial blocks and the in-kernel aux row mask.
    run_case(2, 150, 64, 16, 2, jnp.float32, 128, keys[2], keys[3])
    # bf16 activations take the native-dtype MXU path with f32 accumulation.
    run_case(2, 8, 32, 16, 2, jnp.bfloat16, None, keys[4], keys[5])
    # Inference path: no aux outputs, winners normalized inside the kernel.
    run_case(2, 8, 32, 16, 2, jnp.float32, None, keys[6], keys[7], training=False)

    print("KERNEL_OK")
</pallas_src>

<mosaic_0001>
module attributes {stable_mosaic.version = 11 : i64} {
  func.func @_moe_gate_kernel(%arg0: i32, %arg1: memref<16x32xf32, #tpu.memory_space<vmem>>, %arg2: memref<32x16xf32, #tpu.memory_space<vmem>>, %arg3: memref<16x2xi32, #tpu.memory_space<vmem>>, %arg4: memref<16x2xf32, #tpu.memory_space<vmem>>, %arg5: memref<1x2x16xf32, #tpu.memory_space<vmem>>) attributes {dimension_semantics = [#tpu.dimension_semantics<parallel>], iteration_bounds = array<i64: 1>, scalar_prefetch = 0 : i64, scratch_operands = 0 : i64, tpu.core_type = #tpu.core_type<tc>, window_params = [{transform_indices = @transform_0, window_bounds = array<i64: 16, 32>}, {pipeline_mode = #tpu.pipeline_mode<synchronous>, transform_indices = @transform_1, window_bounds = array<i64: 32, 16>}, {transform_indices = @transform_2, window_bounds = array<i64: 16, 2>}, {transform_indices = @transform_3, window_bounds = array<i64: 16, 2>}, {transform_indices = @transform_4, window_bounds = array<i64: 1, 2, 16>}]} {
    %c0 = arith.constant 0 : index
    %c0_0 = arith.constant 0 : index
    %0 = vector.load %arg1[%c0, %c0_0] : memref<16x32xf32, #tpu.memory_space<vmem>>, vector<16x32xf32>
    %c0_1 = arith.constant 0 : index
    %c0_2 = arith.constant 0 : index
    %1 = vector.load %arg2[%c0_1, %c0_2] : memref<32x16xf32, #tpu.memory_space<vmem>>, vector<32x16xf32>
    %cst = arith.constant dense<0.000000e+00> : vector<16x16xf32>
    %2 = tpu.matmul %0, %1, %cst {dimension_numbers = #tpu.dot_dimension_numbers<[1], [0], [0], [1], [0, 0, 1, 1], [], []>} : vector<16x32xf32>, vector<32x16xf32>, vector<16x16xf32> -> vector<16x16xf32>
    %cst_3 = arith.constant dense<0xFF800000> : vector<16xf32>
    %3 = vector.multi_reduction <maximumf>, %2, %cst_3 [1] : vector<16x16xf32> to vector<16xf32>
    %4 = vector.shape_cast %3 : vector<16xf32> to vector<16x1xf32>
    %5 = vector.broadcast %4 : vector<16x1xf32> to vector<16x16xf32>
    %6 = arith.subf %2, %5 : vector<16x16xf32>
    %7 = math.exp %6 : vector<16x16xf32>
    %cst_4 = arith.constant dense<0.000000e+00> : vector<16xf32>
    %8 = vector.multi_reduction <add>, %7, %cst_4 [1] : vector<16x16xf32> to vector<16xf32>
    %9 = vector.shape_cast %8 : vector<16xf32> to vector<16x1xf32>
    %10 = vector.broadcast %9 : vector<16x1xf32> to vector<16x16xf32>
    %11 = arith.divf %7, %10 : vector<16x16xf32>
    %12 = tpu.iota {dimensions = array<i32: 1>} : vector<16x16xi32>
    %13 = tpu.bitcast %11 : vector<16x16xf32> -> vector<16x16xi32>
    %c-16_i32 = arith.constant -16 : i32
    %14 = vector.broadcast %c-16_i32 : i32 to vector<16x16xi32>
    %15 = arith.andi %13, %14 : vector<16x16xi32>
    %c15_i32 = arith.constant 15 : i32
    %16 = vector.broadcast %c15_i32 : i32 to vector<16x16xi32>
    %17 = arith.subi %16, %12 : vector<16x16xi32>
    %18 = arith.ori %15, %17 : vector<16x16xi32>
    %cst_5 = arith.constant 0.000000e+00 : f32
    %19 = vector.broadcast %cst_5 : f32 to vector<16x16xf32>
    %cst_6 = arith.constant dense<-2147483648> : vector<16xi32>
    %20 = vector.multi_reduction <maxsi>, %18, %cst_6 [1] : vector<16x16xi32> to vector<16xi32>
    %21 = vector.shape_cast %20 : vector<16xi32> to vector<16x1xi32>
    %22 = vector.broadcast %21 : vector<16x1xi32> to vector<16x16xi32>
    %23 = arith.cmpi eq, %18, %22 : vector<16x16xi32>
    %c15_i32_7 = arith.constant 15 : i32
    %24 = vector.broadcast %c15_i32_7 : i32 to vector<16x1xi32>
    %25 = arith.andi %21, %24 : vector<16x1xi32>
    %c15_i32_8 = arith.constant 15 : i32
    %26 = vector.broadcast %c15_i32_8 : i32 to vector<16x1xi32>
    %27 = arith.subi %26, %25 : vector<16x1xi32>
    %cst_9 = arith.constant 0.000000e+00 : f32
    %28 = vector.broadcast %cst_9 : f32 to vector<16x16xf32>
    %29 = arith.select %23, %11, %28 : vector<16x16xi1>, vector<16x16xf32>
    %cst_10 = arith.constant dense<0.000000e+00> : vector<16xf32>
    %30 = vector.multi_reduction <add>, %29, %cst_10 [1] : vector<16x16xf32> to vector<16xf32>
    %31 = vector.shape_cast %30 : vector<16xf32> to vector<16x1xf32>
    %32 = arith.extui %23 : vector<16x16xi1> to vector<16x16xi32>
    %33 = arith.sitofp %32 : vector<16x16xi32> to vector<16x16xf32>
    %34 = arith.addf %19, %33 : vector<16x16xf32>
    %c-2147483648_i32 = arith.constant -2147483648 : i32
    %35 = vector.broadcast %c-2147483648_i32 : i32 to vector<16x16xi32>
    %36 = arith.select %23, %35, %18 : vector<16x16xi1>, vector<16x16xi32>
    %cst_11 = arith.constant dense<-2147483648> : vector<16xi32>
    %37 = vector.multi_reduction <maxsi>, %36, %cst_11 [1] : vector<16x16xi32> to vector<16xi32>
    %38 = vector.shape_cast %37 : vector<16xi32> to vector<16x1xi32>
    %39 = vector.broadcast %38 : vector<16x1xi32> to vector<16x16xi32>
    %40 = arith.cmpi eq, %36, %39 : vector<16x16xi32>
    %c15_i32_12 = arith.constant 15 : i32
    %41 = vector.broadcast %c15_i32_12 : i32 to vector<16x1xi32>
    %42 = arith.andi %38, %41 : vector<16x1xi32>
    %c15_i32_13 = arith.constant 15 : i32
    %43 = vector.broadcast %c15_i32_13 : i32 to vector<16x1xi32>
    %44 = arith.subi %43, %42 : vector<16x1xi32>
    %cst_14 = arith.constant 0.000000e+00 : f32
    %45 = vector.broadcast %cst_14 : f32 to vector<16x16xf32>
    %46 = arith.select %40, %11, %45 : vector<16x16xi1>, vector<16x16xf32>
    %cst_15 = arith.constant dense<0.000000e+00> : vector<16xf32>
    %47 = vector.multi_reduction <add>, %46, %cst_15 [1] : vector<16x16xf32> to vector<16xf32>
    %48 = vector.shape_cast %47 : vector<16xf32> to vector<16x1xf32>
    %49 = arith.extui %40 : vector<16x16xi1> to vector<16x16xi32>
    %50 = arith.sitofp %49 : vector<16x16xi32> to vector<16x16xf32>
    %51 = arith.addf %34, %50 : vector<16x16xf32>
    %52 = tpu.concatenate %27, %44 in 1 : vector<16x1xi32>, vector<16x1xi32> -> vector<16x2xi32>
    %c0_16 = arith.constant 0 : index
    %c0_17 = arith.constant 0 : index
    %53 = vector.load %arg3[%c0_16, %c0_17] : memref<16x2xi32, #tpu.memory_space<vmem>>, vector<16x2xi32>
    tpu.vector_store %arg3[%c0_16, %c0_17], %52 {strides = array<i32>} : memref<16x2xi32, #tpu.memory_space<vmem>>, vector<16x2xi32>,
    %54 = tpu.concatenate %31, %48 in 1 : vector<16x1xf32>, vector<16x1xf32> -> vector<16x2xf32>
    %c0_18 = arith.constant 0 : index
    %c0_19 = arith.constant 0 : index
    %55 = vector.load %arg4[%c0_18, %c0_19] : memref<16x2xf32, #tpu.memory_space<vmem>>, vector<16x2xf32>
    tpu.vector_store %arg4[%c0_18, %c0_19], %54 {strides = array<i32>} : memref<16x2xf32, #tpu.memory_space<vmem>>, vector<16x2xf32>,
    %c16_i32 = arith.constant 16 : i32
    %56 = arith.muli %arg0, %c16_i32 : i32
    %57 = tpu.iota {dimensions = array<i32: 0>} : vector<16x1xi32>
    %58 = vector.broadcast %56 : i32 to vector<16x1xi32>
    %59 = arith.addi %58, %57 : vector<16x1xi32>
    %c16_i32_20 = arith.constant 16 : i32
    %60 = vector.broadcast %c16_i32_20 : i32 to vector<16x1xi32>
    %61 = arith.cmpi slt, %59, %60 : vector<16x1xi32>
    %cst_21 = arith.constant 1.000000e+00 : f32
    %62 = vector.broadcast %cst_21 : f32 to vector<1x16xf32>
    %cst_22 = arith.constant 0.000000e+00 : f32
    %63 = vector.shape_cast %61 : vector<16x1xi1> to vector<16x1xi1>
    %64 = vector.broadcast %63 : vector<16x1xi1> to vector<16x16xi1>
    %65 = vector.broadcast %cst_22 : f32 to vector<16x16xf32>
    %66 = arith.select %64, %11, %65 : vector<16x16xi1>, vector<16x16xf32>
    %cst_23 = arith.constant dense<0.000000e+00> : vector<1x16xf32>
    %67 = tpu.matmul %62, %66, %cst_23 {dimension_numbers = #tpu.dot_dimension_numbers<[1], [0], [0], [1], [0, 0, 1, 1], [], []>} : vector<1x16xf32>, vector<16x16xf32>, vector<1x16xf32> -> vector<1x16xf32>
    %cst_24 = arith.constant 0.000000e+00 : f32
    %68 = vector.shape_cast %61 : vector<16x1xi1> to vector<16x1xi1>
    %69 = vector.broadcast %68 : vector<16x1xi1> to vector<16x16xi1>
    %70 = vector.broadcast %cst_24 : f32 to vector<16x16xf32>
    %71 = arith.select %69, %51, %70 : vector<16x16xi1>, vector<16x16xf32>
    %cst_25 = arith.constant dense<0.000000e+00> : vector<1x16xf32>
    %72 = tpu.matmul %62, %71, %cst_25 {dimension_numbers = #tpu.dot_dimension_numbers<[1], [0], [0], [1], [0, 0, 1, 1], [], []>} : vector<1x16xf32>, vector<16x16xf32>, vector<1x16xf32> -> vector<1x16xf32>
    %73 = vector.shape_cast %67 : vector<1x16xf32> to vector<1x1x16xf32>
    %c0_26 = arith.constant 0 : index
    %c0_27 = arith.constant 0 : index
    %c0_28 = arith.constant 0 : index
    %74 = vector.load %arg5[%c0_26, %c0_27, %c0_28] : memref<1x2x16xf32, #tpu.memory_space<vmem>>, vector<1x1x16xf32>
    tpu.vector_store %arg5[%c0_26, %c0_27, %c0_28], %73 {strides = array<i32>} : memref<1x2x16xf32, #tpu.memory_space<vmem>>, vector<1x1x16xf32>,
    %75 = vector.shape_cast %72 : vector<1x16xf32> to vector<1x1x16xf32>
    %c0_29 = arith.constant 0 : index
    %c1 = arith.constant 1 : index
    %c0_30 = arith.constant 0 : index
    %76 = vector.load %arg5[%c0_29, %c1, %c0_30] : memref<1x2x16xf32, #tpu.memory_space<vmem>>, vector<1x1x16xf32>
    tpu.vector_store %arg5[%c0_29, %c1, %c0_30], %75 {strides = array<i32>} : memref<1x2x16xf32, #tpu.memory_space<vmem>>, vector<1x1x16xf32>,
    return
  }
  func.func @transform_0(%arg0: i32) -> (i32, i32) {
    %c0_i32 = arith.constant 0 : i32
    %c0_i32_0 = arith.constant 0 : i32
    return %arg0, %c0_i32 : i32, i32
  }
  func.func @transform_1(%arg0: i32) -> (i32, i32) {
    %c0_i32 = arith.constant 0 : i32
    %c0_i32_0 = arith.constant 0 : i32
    %c0_i32_1 = arith.constant 0 : i32
    return %c0_i32, %c0_i32_0 : i32, i32
  }
  func.func @transform_2(%arg0: i32) -> (i32, i32) {
    %c0_i32 = arith.constant 0 : i32
    %c0_i32_0 = arith.constant 0 : i32
    return %arg0, %c0_i32 : i32, i32
  }
  func.func @transform_3(%arg0: i32) -> (i32, i32) {
    %c0_i32 = arith.constant 0 : i32
    %c0_i32_0 = arith.constant 0 : i32
    return %arg0, %c0_i32 : i32, i32
  }
  func.func @transform_4(%arg0: i32) -> (i32, i32, i32) {
    %c0_i32 = arith.constant 0 : i32
    %c0_i32_0 = arith.constant 0 : i32
    %c0_i32_1 = arith.constant 0 : i32
    return %arg0, %c0_i32, %c0_i32_0 : i32, i32, i32
  }
}

</mosaic_0001>

<bundles_post_ra>
// kernel: tpu_custom_call.1
= control target key start
LH: loop header
LB: loop body
LE: loop exit
PB: predicated region body
PF: predicated region fallthrough
CT: control target
= control target key end

     0   :  { %s476_s0 = inlined_call_operand.vmem [shape: f32[16,32], index: 0, kind: input, shape index: {}]   ;;  %s477_s1 = inlined_call_operand.vmem [shape: f32[32,16], index: 1, kind: input, shape index: {}]   ;;  %s478_s2 = inlined_call_operand.vmem [shape: s32[16,2], index: 2, kind: output, shape index: {0}]   ;;  %s479_s3 = inlined_call_operand.vmem [shape: f32[16,2], index: 3, kind: output, shape index: {1}]   ;;  %s480_s4 = inlined_call_operand.hbm [shape: f32[1,2,16], index: 4, kind: output, shape index: {2}]  }
   0x1   :  { %v20_v0 = vld [vmem:[%s477_s1 + $0x18] sm:$0xff]  ;;  %v19_v1 = vld [vmem:[%s477_s1 + $0x10] sm:$0xff]  ;;  %v18_v2 = vld [vmem:[%s477_s1 + $0x8] sm:$0xff] }
   0x2   :  { %316 = vmatpush.msra.mxu3 %v20_v0  ;;  %40 = vmatpush.msra.mxu0 %v20_v0 }
   0x3   :  { %10 = vsyncpa [#allocation3], 0  ;;  %v17_v3 = vld [vmem:[%s477_s1] sm:$0xff]  ;;  %v16_v4 = vld [vmem:[%s476_s0 + $0x8] sm:$0xff]  ;;  %vm21_vm0 = vcmask 261120   ;;  %vm51_vm1 = vcmask 130048   ;;  %v100_v25 = vlaneseq }
   0x4   :  { %317 = vmatpush.msra.mxu3 %v19_v1  ;;  %41 = vmatpush.msra.mxu0 %v19_v1  ;;  %v15_v5 = vld [vmem:[%s476_s0] sm:$0xff]  ;;  %s359_s6 = smov [#allocation2]   ;;  %s295_s10 = sshll.u32 %s480_s4, 4  ;;  %s296_s10 = int_to_ptr.hbm [resolvable:$true] %s295_s10 }
   0x5   :  { %v101_v30 = vand.u32 127, %v100_v25  ;;  %s293_s7 = sshll.u32 %s359_s6, 4  ;;  %s294_s7 = int_to_ptr.vmem [resolvable:$true] %s293_s7 }
   0x6   :  { %318 = vmatpush.msra.mxu3 %v18_v2  ;;  %42 = vmatpush.msra.mxu0 %v18_v2 }
   0x7   :  { %v106_v38 = vsub.s32 15, %v101_v30 }
   0x8   :  { %319 = vmatpush.msra.mxu3 %v17_v3  ;;  %43 = vmatpush.msra.mxu0 %v17_v3 }
   0x9   :  { %309 = vmatmul.msk.f32.vlgmr.msra.gmra.mxu3 %vm21_vm0, %v16_v4  ;;  %308 = vmatmul.msk.f32.vlgmr.msra.gmra.mxu0 %vm21_vm0, %v15_v5 }
  0x86   :  { %v45_v8 = vpop.f32.mrf.mxu0 }
  0x87   :  { %v52_v9 = vsel %vm51_vm1, %v45_v8, -inf }
  0x8c   :  { %v48_v6 = vpop.f32.mrf.mxu3 }
  0x8d   :  { %v55_v7 = vsel %vm51_vm1, %v48_v6, -inf }
  0x8e   :  { %56 = vmax.xlane.f32.xlu0 %v55_v7 }
  0x96   :  { %53 = vmax.xlane.f32.xlu0 %v52_v9 }
 0x101   :  { %v57_v10 = vpop.xlane.xlu0 %56 }
 0x102   :  { %v59_v11 = vsub.f32 %v48_v6, %v57_v10 }
 0x104   :  { %v62_v12 = vmul.f32 1.442695, %v59_v11 }
 0x106   :  { %323 = vpow2.f32 %v62_v12 }
 0x109   :  { %v54_v13 = vpop.xlane.xlu0 %53 }
 0x10a   :  { %v58_v14 = vsub.f32 %v45_v8, %v54_v13 }
 0x10c   :  { %v324_v15 = vpop.eup %323  ;;  %v60_v16 = vmul.f32 1.442695, %v58_v14 }
 0x10d   :  { %v67_v17 = vsel %vm51_vm1, %v324_v15, 0.0 }
 0x10e   :  { %325 = vpow2.f32 %v60_v16  ;;  %68 = vadd.xlane.f32.xlu1 %v67_v17 }
 0x114   :  { %v326_v18 = vpop.eup %325 }
 0x115   :  { %v64_v19 = vsel %vm51_vm1, %v326_v18, 0.0 }
 0x116   :  { %65 = vadd.xlane.f32.xlu1 %v64_v19 }
 0x181   :  { %v69_v20 = vpop.xlane.xlu1 %68 }
 0x182   :  { %327 = vrcp.f32 %v69_v20  ;;  %v96_v26 = vand.u32 2147483648, %v69_v20  ;;  %v94_v28 = vand.u32 2147483647, %v69_v20  ;;  %vm90_vm3 = vweird.f32 %v69_v20 }
 0x184   :  { %v97_v32 = vor.u32 1.1754944e-38, %v96_v26  ;;  %vm95_vm5 = vcmp.eq.f32.partialorder %v94_v28, 8.507059e+37 }
 0x188   :  { %v328_v21 = vpop.eup %327 }
 0x189   :  { %v86_v22 = vmul.f32 %v328_v21, %v69_v20  ;;  %v66_v23 = vpop.xlane.xlu1 %65  ;;  %vm91_vm2 = vweird.f32 %v328_v21 }
 0x18a   :  { %329 = vrcp.f32 %v66_v23  ;;  %vm92_vm4 = vmor %vm90_vm3, %vm91_vm2  ;;  %v81_v39 = vand.u32 2147483648, %v66_v23  ;;  %v79_v41 = vand.u32 2147483647, %v66_v23  ;;  %vm75_vm7 = vweird.f32 %v66_v23 }
 0x18b   :  { %v87_v24 = vsub.f32 1.0, %v86_v22  ;;  %vm211_vm2 = vcmask 7168   ;;  %vm214_vm3 = vcmask 15360  }
 0x18c   :  { %v82_v45 = vor.u32 1.1754944e-38, %v81_v39  ;;  %vm80_vm9 = vcmp.eq.f32.partialorder %v79_v41, 8.507059e+37  ;;  %v358_v41 = vmov 0.0  }
 0x18d   :  { %v88_v27 = vmul.f32 %v328_v21, %v87_v24 }
 0x18f   :  { %v89_v29 = vadd.f32 %v328_v21, %v88_v27 }
 0x190   :  { %v330_v31 = vpop.eup %329 }
 0x191   :  { %v71_v33 = vmul.f32 %v330_v31, %v66_v23  ;;  %v93_v34 = vsel %vm92_vm4, %v328_v21, %v89_v29  ;;  %vm76_vm6 = vweird.f32 %v330_v31 }
 0x192   :  { %v98_v35 = vsel %vm95_vm5, %v97_v32, %v93_v34  ;;  %vm77_vm8 = vmor %vm75_vm7, %vm76_vm6  ;;  %vm281_vm5 = vcmask 122880  }
 0x193   :  { %v72_v36 = vsub.f32 1.0, %v71_v33  ;;  %v407_v37 = vmul.f32 %v324_v15, %v98_v35 }
 0x195   :  { %v73_v40 = vmul.f32 %v330_v31, %v72_v36  ;;  %253 = vmatpush.msra.mxu1 %v407_v37  ;;  %v105_v42 = vand.u32 4294967280, %v407_v37 }
 0x197   :  { %v74_v43 = vadd.f32 %v330_v31, %v73_v40  ;;  %v411_v44 = vor.u32 %v106_v38, %v105_v42 }
 0x199   :  { %v78_v46 = vsel %vm77_vm8, %v330_v31, %v74_v43  ;;  %v124_v47 = vsel %vm51_vm1, %v411_v44, 2147483648  ;;  %v357_v31 = vmov 1.0  }
 0x19a   :  { %v83_v48 = vsel %vm80_vm9, %v82_v45, %v78_v46  ;;  %v126_v49 = vshra.s32 %v124_v47, 16  ;;  %v125_v57 = vand.u32 65535, %v124_v47 }
 0x19b   :  { %v415_v50 = vmul.f32 %v326_v18, %v83_v48 }
 0x19c   :  { %v128_v51 = vcvt.s32.f32 %v126_v49  ;;  %v127_v59 = vcvt.s32.f32 %v125_v57 }
 0x19d   :  { %254 = vmatpush.msra.mxu1 %v415_v50  ;;  %v104_v52 = vand.u32 4294967280, %v415_v50 }
 0x19e   :  { %129 = vmax.xlane.f32.xlu2 %v128_v51  ;;  %314 = vmatmul.msk.f32.vlgmr.msra.gmra.mxu1 %vm51_vm1, %v357_v31 }
 0x19f   :  { %v419_v53 = vor.u32 %v106_v38, %v104_v52 }
 0x1a1   :  { %v109_v54 = vsel %vm51_vm1, %v419_v53, 2147483648 }
 0x1a2   :  { %v111_v55 = vshra.s32 %v109_v54, 16  ;;  %v110_v61 = vand.u32 65535, %v109_v54 }
 0x1a4   :  { %v113_v56 = vcvt.s32.f32 %v111_v55  ;;  %v112_v63 = vcvt.s32.f32 %v110_v61 }
 0x1a6   :  { %114 = vmax.xlane.f32.xlu2 %v113_v56 }
 0x211   :  { %v130_v58 = vpop.xlane.xlu2 %129 }
 0x212   :  { %vm131_vm10 = vcmp.eq.f32.partialorder %v128_v51, %v130_v58  ;;  %v136_v1 = vcvt.f32.s32 %v130_v58 }
 0x213   :  { %v132_v60 = vsel %vm131_vm10, %v127_v59, -inf }
 0x214   :  { %133 = vmax.xlane.f32.xlu0 %v132_v60  ;;  %v137_v3 = vshll.u32 %v136_v1, 16 }
 0x219   :  { %v115_v62 = vpop.xlane.xlu2 %114 }
 0x21a   :  { %vm116_vm11 = vcmp.eq.f32.partialorder %v113_v56, %v115_v62  ;;  %v121_v6 = vcvt.f32.s32 %v115_v62 }
 0x21b   :  { %v117_v0 = vsel %vm116_vm11, %v112_v63, -inf }
 0x21c   :  { %118 = vmax.xlane.f32.xlu1 %v117_v0  ;;  %v122_v11 = vshll.u32 %v121_v6, 16 }
 0x287   :  { %v134_v2 = vpop.xlane.xlu0 %133 }
 0x288   :  { %v135_v4 = vcvt.f32.s32 %v134_v2 }
 0x28a   :  { %v138_v5 = vadd.s32 %v137_v3, %v135_v4 }
 0x28c   :  { %vm140_vm12 = vcmp.eq.s32.totalorder %v411_v44, %v138_v5  ;;  %v142_v36 = vand.u32 15, %v138_v5 }
 0x28d   :  { %v160_v7 = vsel %vm140_vm12, 2147483648, %v411_v44  ;;  %v146_v26 = vsel %vm140_vm12, %v407_v37, 0.0  ;;  %v311_v42 = vsel %vm140_vm12, 1.0, %v358_v41 }
 0x28e   :  { %v176_v8 = vsel %vm51_vm1, %v160_v7, 2147483648  ;;  %v150_v29 = vsel %vm51_vm1, %v146_v26, 0.0  ;;  %v144_v43 = vsub.s32 15, %v142_v36 }
 0x28f   :  { %v119_v9 = vpop.xlane.xlu1 %118  ;;  %v178_v10 = vshra.s32 %v176_v8, 16  ;;  %v177_v21 = vand.u32 65535, %v176_v8 }
 0x290   :  { %v120_v12 = vcvt.f32.s32 %v119_v9 }
 0x291   :  { %v180_v13 = vcvt.s32.f32 %v178_v10  ;;  %v179_v23 = vcvt.s32.f32 %v177_v21 }
 0x292   :  { %v123_v14 = vadd.s32 %v122_v11, %v120_v12 }
 0x293   :  { %181 = vmax.xlane.f32.xlu2 %v180_v13 }
 0x294   :  { %vm139_vm13 = vcmp.eq.s32.totalorder %v419_v53, %v123_v14 }
 0x295   :  { %v159_v15 = vsel %vm139_vm13, 2147483648, %v419_v53  ;;  %v145_v19 = vsel %vm139_vm13, %v415_v50, 0.0  ;;  %v310_v58 = vsel %vm139_vm13, 1.0, %v358_v41 }
 0x296   :  { %v161_v16 = vsel %vm51_vm1, %v159_v15, 2147483648  ;;  %v147_v20 = vsel %vm51_vm1, %v145_v19, 0.0 }
 0x297   :  { %v163_v17 = vshra.s32 %v161_v16, 16  ;;  %v162_v25 = vand.u32 65535, %v161_v16 }
 0x299   :  { %v165_v18 = vcvt.s32.f32 %v163_v17  ;;  %v164_v28 = vcvt.s32.f32 %v162_v25 }
 0x29b   :  { %166 = vmax.xlane.f32.xlu0 %v165_v18 }
 0x2a3   :  { %148 = vadd.xlane.f32.xlu0 %v147_v20 }
 0x306   :  { %v182_v22 = vpop.xlane.xlu2 %181 }
 0x307   :  { %vm183_vm14 = vcmp.eq.f32.partialorder %v180_v13, %v182_v22  ;;  %v188_v32 = vcvt.f32.s32 %v182_v22 }
 0x308   :  { %v184_v24 = vsel %vm183_vm14, %v179_v23, -inf }
 0x309   :  { %185 = vmax.xlane.f32.xlu1 %v184_v24  ;;  %v189_v34 = vshll.u32 %v188_v32, 16 }
 0x30e   :  { %v167_v27 = vpop.xlane.xlu0 %166 }
 0x30f   :  { %vm168_vm15 = vcmp.eq.f32.partialorder %v165_v18, %v167_v27  ;;  %v173_v39 = vcvt.f32.s32 %v167_v27 }
 0x310   :  { %v169_v30 = vsel %vm168_vm15, %v164_v28, -inf }
 0x311   :  { %151 = vadd.xlane.f32.xlu1 %v150_v29  ;;  %170 = vmax.xlane.f32.xlu2 %v169_v30  ;;  %v174_v52 = vshll.u32 %v173_v39, 16 }
 0x316   :  { %v149_v53 = vpop.xlane.xlu0 %148 }
 0x37c   :  { %v186_v33 = vpop.xlane.xlu1 %185 }
 0x37d   :  { %v187_v35 = vcvt.f32.s32 %v186_v33 }
 0x37f   :  { %v190_v38 = vadd.s32 %v189_v34, %v187_v35 }
 0x381   :  { %v194_v40 = vand.u32 15, %v190_v38  ;;  %vm192_vm0 = vcmp.eq.s32.totalorder %v160_v7, %v190_v38 }
 0x382   :  { %v198_v45 = vsel %vm192_vm0, %v407_v37, 0.0  ;;  %v313_v46 = vsel %vm192_vm0, 1.0, %v358_v41  ;;  %v141_v37 = vand.u32 15, %v123_v14 }
 0x383   :  { %v196_v47 = vsub.s32 15, %v194_v40  ;;  %v202_v48 = vsel %vm51_vm1, %v198_v45, 0.0  ;;  %v210_v49 = vadd.f32 %v313_v46, %v311_v42 }
 0x384   :  { %203 = vadd.xlane.f32.xlu0 %v202_v48  ;;  %v171_v51 = vpop.xlane.xlu2 %170  ;;  %v143_v60 = vsub.s32 15, %v141_v37  ;;  %v152_v1 = vpop.xlane.xlu1 %151 }
 0x385   :  { %v172_v54 = vcvt.f32.s32 %v171_v51  ;;  %275 = vmatpush.msra.mxu2 %v210_v49  ;;  %v213_v55 = vsel %vm211_vm2, %v144_v43, %v196_v47 }
 0x386   :  { %216 = vst.msk [vmem:[%s478_s2 + $0x8] sm:$0xff] %vm214_vm3, %v213_v55 }
 0x387   :  { %v175_v44 = vadd.s32 %v174_v52, %v172_v54 }
 0x389   :  { %v193_v56 = vand.u32 15, %v175_v44  ;;  %vm191_vm4 = vcmp.eq.s32.totalorder %v159_v15, %v175_v44 }
 0x38a   :  { %v197_v57 = vsel %vm191_vm4, %v415_v50, 0.0  ;;  %v312_v59 = vsel %vm191_vm4, 1.0, %v358_v41  ;;  %v256_v50 = vpop.f32.mrf.mxu1 }
 0x38b   :  { %v195_v61 = vsub.s32 15, %v193_v56  ;;  %v199_v62 = vsel %vm51_vm1, %v197_v57, 0.0  ;;  %v209_v63 = vadd.f32 %v312_v59, %v310_v58  ;;  %282 = vst.msk [vmem:[#allocation2] sm:$0x1] %vm281_vm5, %v256_v50 }
 0x38c   :  { %200 = vadd.xlane.f32.xlu2 %v199_v62 }
 0x38d   :  { %276 = vmatpush.msra.mxu2 %v209_v63  ;;  %v212_v0 = vsel %vm211_vm2, %v143_v60, %v195_v61 }
 0x38e   :  { %315 = vmatmul.msk.f32.vlgmr.msra.gmra.mxu2 %vm51_vm1, %v357_v31  ;;  %215 = vst.msk [vmem:[%s478_s2] sm:$0xff] %vm214_vm3, %v212_v0 }
 0x3f7   :  { %v204_v2 = vpop.xlane.xlu0 %203 }
 0x3f8   :  { %v218_v3 = vsel %vm211_vm2, %v152_v1, %v204_v2 }
 0x3f9   :  { %220 = vst.msk [vmem:[%s479_s3 + $0x8] sm:$0xff] %vm214_vm3, %v218_v3 }
 0x3ff   :  { %v201_v4 = vpop.xlane.xlu2 %200 }
 0x400   :  { %v217_v5 = vsel %vm211_vm2, %v149_v53, %v201_v4 }
 0x401   :  { %219 = vst.msk [vmem:[%s479_s3] sm:$0xff] %vm214_vm3, %v217_v5 }
 0x411   :  { %v278_v6 = vpop.f32.mrf.mxu2 }
 0x412   :  { %283 = vst.msk [vmem:[#allocation2 + $0x1] sm:$0x1] %vm281_vm5, %v278_v6 }
 0x413   :  { %298 = dma.vmem_to_hbm [thread:$0]  %s294_s7, 32, %s296_s10, [#allocation3]  }
 0x414   :  { %355 = dma.done.wait [#allocation3], 32  }
 0x415   :  { %356 = vsyncadd [#allocation3], 4294967264 }
 0x416   :  { %307 = vsyncpa [#allocation3], 1 }

</bundles_post_ra>
